<compile_context>
chip_gen: v6e
topology: v6e:2x2x1
jax: 0.10.0
libtpu: 0.0.40
codegen_flags: <defaults>
</compile_context>

<pallas_src>
import math

import jax
import jax.numpy as jnp
from jax.experimental import pallas as pl
from jax.experimental.pallas import tpu as pltpu


def _diag_linear_kernel(x_ref, w_ref, b_ref, o_ref):
    # x_ref: (TB, H); w_ref / b_ref: (1, H) -> broadcast over rows (VPU only).
    o_ref[...] = (x_ref[...] * w_ref[...] + b_ref[...]).astype(o_ref.dtype)


def _sublane_packing(dtype):
    """Sublane packing granularity: 8 for >=32-bit, 16 for bf16, 32 for 8-bit."""
    bits = jnp.dtype(dtype).itemsize * 8
    if bits >= 32:
        return 8
    return 8 * (32 // bits)


def _pick_block_rows(n_rows, lane_h, dtype, target_tile_bytes=2 * 1024 * 1024):
    """Pick block_rows so each x / o tile is ~target_tile_bytes.

    Keeps double-buffered x + o tiles around 8 MiB (comfortably under the
    default scoped-VMEM limits) while remaining large enough to amortize the
    ~0.35 us per-grid-step overhead and sit near the HBM roofline.
    """
    itemsize = jnp.dtype(dtype).itemsize
    pack = _sublane_packing(dtype)
    rows = max(1, target_tile_bytes // max(1, lane_h * itemsize))
    rows = min(rows, 1024)              # no benefit past the roofline
    rows = (rows // pack) * pack        # respect sublane packing
    rows = max(rows, pack)
    if rows >= n_rows:
        return n_rows                   # full extent is always a legal block
    return rows


def diagonal_linear(x, weight, bias=None, *, block_rows=None, force_pallas=False):
    """y = x * weight + bias over the last dim (== x @ diag(weight).T + bias).

    Accepts any (N, *, H) input; weight / bias are shape (H,).
    """
    orig_shape = x.shape
    h = orig_shape[-1]
    assert weight.shape == (h,), "weight must be shape (H,)"
    if bias is None:
        bias = jnp.zeros((h,), dtype=weight.dtype)

    # Tiny-shape fast path: pallas_call dispatch overhead dwarfs the VPU work
    # and XLA fuses this elementwise op for free.
    if not force_pallas and x.size < (1 << 16):
        return (x * weight + bias).astype(x.dtype)

    # Flatten leading dims: (N, *, H) -> (rows, H).
    rows = 1
    for d in orig_shape[:-1]:
        rows *= d
    x2 = x.reshape(rows, h)
    w1 = weight
    b1 = bias

    # Lane-dense packing for small H: fold k rows so the last dim is a
    # multiple of 128 (pure wrapper-side layout plumbing).
    lane_h = h
    if h < 128 and 128 % h == 0 and rows % (128 // h) == 0:
        k = 128 // h
        lane_h = k * h
        rows = rows // k
        x2 = x2.reshape(rows, lane_h)
        w1 = jnp.tile(w1, k)
        b1 = jnp.tile(b1, k)

    w2 = w1.reshape(1, lane_h)
    b2 = b1.reshape(1, lane_h)

    # Tile-size selection (VMEM- and sublane-packing-aware).
    pack = _sublane_packing(x.dtype)
    if block_rows is None:
        block_rows = _pick_block_rows(rows, lane_h, x.dtype)
    else:
        block_rows = min(block_rows, rows)
        if block_rows < rows and block_rows % pack != 0:
            block_rows = max(pack, (block_rows // pack) * pack)

    grid = (pl.cdiv(rows, block_rows),)   # ragged last block handled by Pallas

    out2 = pl.pallas_call(
        _diag_linear_kernel,
        out_shape=jax.ShapeDtypeStruct((rows, lane_h), x.dtype),
        grid_spec=pltpu.PrefetchScalarGridSpec(
            num_scalar_prefetch=0,
            grid=grid,
            in_specs=[
                pl.BlockSpec((block_rows, lane_h), lambda i: (i, 0)),
                pl.BlockSpec((1, lane_h), lambda i: (0, 0)),  # resident in VMEM
                pl.BlockSpec((1, lane_h), lambda i: (0, 0)),  # resident in VMEM
            ],
            out_specs=pl.BlockSpec((block_rows, lane_h), lambda i: (i, 0)),
        ),
        compiler_params=pltpu.CompilerParams(
            # Row axis is independent -> shard across both v7x TensorCores.
            dimension_semantics=("parallel",),
        ),
    )(x2, w2, b2)

    return out2.reshape(orig_shape)


if __name__ == "__main__":
    key = jax.random.PRNGKey(0)
    kx, kw, kb, kx2, kx3 = jax.random.split(key, 5)

    # Small shapes consistent with the module: batch=8, features=32.
    batch, features = 8, 32
    x = jax.random.normal(kx, (batch, features), dtype=jnp.float32)

    # Deterministic parameter init mirroring reset_parameters():
    #   weight ~ U(-1, 1), bias ~ U(-1/sqrt(fan_in), 1/sqrt(fan_in))
    weight = jax.random.uniform(kw, (features,), dtype=jnp.float32,
                                minval=-1.0, maxval=1.0)
    bound = 1.0 / math.sqrt(features)
    bias = jax.random.uniform(kb, (features,), dtype=jnp.float32,
                              minval=-bound, maxval=bound)

    # Force the Pallas path so the kernel is actually exercised at demo size.
    y = diagonal_linear(x, weight, bias, force_pallas=True)
    y = jax.block_until_ready(y)
    y_ref = x @ jnp.diag(weight).T + bias
    assert jnp.allclose(y, y_ref, atol=1e-5, rtol=1e-5), "mismatch (demo)"

    # Check 2: multi-step grid + ragged final tile + lane-dense packing.
    x_big = jax.random.normal(kx2, (40, features), dtype=jnp.float32)
    y_big = diagonal_linear(x_big, weight, bias, block_rows=8, force_pallas=True)
    y_big = jax.block_until_ready(y_big)
    y_big_ref = x_big * weight + bias
    assert jnp.allclose(y_big, y_big_ref, atol=1e-5, rtol=1e-5), "mismatch (tiled)"

    # Check 3: H already a multiple of 128 (no lane packing) with extra
    # leading dims and auto-picked block_rows.
    h3 = 128
    w3 = jax.random.uniform(kw, (h3,), dtype=jnp.float32, minval=-1.0, maxval=1.0)
    b3 = jax.random.uniform(kb, (h3,), dtype=jnp.float32,
                            minval=-1.0 / math.sqrt(h3), maxval=1.0 / math.sqrt(h3))
    x3 = jax.random.normal(kx3, (4, 16, h3), dtype=jnp.float32)
    y3 = diagonal_linear(x3, w3, b3, force_pallas=True)
    y3 = jax.block_until_ready(y3)
    y3_ref = x3 * w3 + b3
    assert jnp.allclose(y3, y3_ref, atol=1e-5, rtol=1e-5), "mismatch (3-D)"

    print("KERNEL_OK")
</pallas_src>

<mosaic_0001>
module attributes {stable_mosaic.version = 11 : i64} {
  func.func @_diag_linear_kernel(%arg0: i32, %arg1: memref<2x128xf32, #tpu.memory_space<vmem>>, %arg2: memref<1x128xf32, #tpu.memory_space<vmem>>, %arg3: memref<1x128xf32, #tpu.memory_space<vmem>>, %arg4: memref<2x128xf32, #tpu.memory_space<vmem>>) attributes {dimension_semantics = [#tpu.dimension_semantics<parallel>], iteration_bounds = array<i64: 1>, scalar_prefetch = 0 : i64, scratch_operands = 0 : i64, tpu.core_type = #tpu.core_type<tc>, window_params = [{transform_indices = @transform_0, window_bounds = array<i64: 2, 128>}, {pipeline_mode = #tpu.pipeline_mode<synchronous>, transform_indices = @transform_1, window_bounds = array<i64: 1, 128>}, {pipeline_mode = #tpu.pipeline_mode<synchronous>, transform_indices = @transform_2, window_bounds = array<i64: 1, 128>}, {transform_indices = @transform_3, window_bounds = array<i64: 2, 128>}]} {
    %c0 = arith.constant 0 : index
    %c0_0 = arith.constant 0 : index
    %0 = vector.load %arg1[%c0, %c0_0] : memref<2x128xf32, #tpu.memory_space<vmem>>, vector<2x128xf32>
    %c0_1 = arith.constant 0 : index
    %c0_2 = arith.constant 0 : index
    %1 = vector.load %arg2[%c0_1, %c0_2] : memref<1x128xf32, #tpu.memory_space<vmem>>, vector<1x128xf32>
    %2 = vector.broadcast %1 : vector<1x128xf32> to vector<2x128xf32>
    %3 = arith.mulf %0, %2 : vector<2x128xf32>
    %c0_3 = arith.constant 0 : index
    %c0_4 = arith.constant 0 : index
    %4 = vector.load %arg3[%c0_3, %c0_4] : memref<1x128xf32, #tpu.memory_space<vmem>>, vector<1x128xf32>
    %5 = vector.broadcast %4 : vector<1x128xf32> to vector<2x128xf32>
    %6 = arith.addf %3, %5 : vector<2x128xf32>
    %c0_5 = arith.constant 0 : index
    %c0_6 = arith.constant 0 : index
    %7 = vector.load %arg4[%c0_5, %c0_6] : memref<2x128xf32, #tpu.memory_space<vmem>>, vector<2x128xf32>
    tpu.vector_store %arg4[%c0_5, %c0_6], %6 {strides = array<i32>} : memref<2x128xf32, #tpu.memory_space<vmem>>, vector<2x128xf32>,
    return
  }
  func.func @transform_0(%arg0: i32) -> (i32, i32) {
    %c0_i32 = arith.constant 0 : i32
    %c0_i32_0 = arith.constant 0 : i32
    return %arg0, %c0_i32 : i32, i32
  }
  func.func @transform_1(%arg0: i32) -> (i32, i32) {
    %c0_i32 = arith.constant 0 : i32
    %c0_i32_0 = arith.constant 0 : i32
    %c0_i32_1 = arith.constant 0 : i32
    return %c0_i32, %c0_i32_0 : i32, i32
  }
  func.func @transform_2(%arg0: i32) -> (i32, i32) {
    %c0_i32 = arith.constant 0 : i32
    %c0_i32_0 = arith.constant 0 : i32
    %c0_i32_1 = arith.constant 0 : i32
    return %c0_i32, %c0_i32_0 : i32, i32
  }
  func.func @transform_3(%arg0: i32) -> (i32, i32) {
    %c0_i32 = arith.constant 0 : i32
    %c0_i32_0 = arith.constant 0 : i32
    return %arg0, %c0_i32 : i32, i32
  }
}

</mosaic_0001>

<bundles_post_ra>
// kernel: tpu_custom_call.1
= control target key start
LH: loop header
LB: loop body
LE: loop exit
PB: predicated region body
PF: predicated region fallthrough
CT: control target
= control target key end

     0   :  { %8 = vsyncpa [#allocation3], 0  ;;  %s142_s0 = inlined_call_operand.hbm [shape: f32[2,128], index: 0, kind: input, shape index: {}]   ;;  %s143_s1 = inlined_call_operand.vmem [shape: f32[1,128], index: 1, kind: input, shape index: {}]   ;;  %s144_s2 = inlined_call_operand.vmem [shape: f32[1,128], index: 2, kind: input, shape index: {}]   ;;  %s145_s3 = inlined_call_operand.hbm [shape: f32[2,128], index: 3, kind: output, shape index: {}]  }
   0x1   :  { %9 = vsyncpa [#allocation4], 0  ;;  %s108_s12 = smov [#allocation2]  }
   0x2   :  { %s16_s13 = sshll.u32 %s108_s12, 4  ;;  %s17_s13 = int_to_ptr.vmem [resolvable:$true] %s16_s13 }
   0x3   :  { %s72_s14 = scalar_lea.vmem %s17_s13, 32  ;;  %p77_p1 = scmp.lt.s32.totalorder %s17_s13, %s17_s13 }
   0x4   :  { %p73_p0 = scmp.ne.s32.totalorder %s17_s13, %s72_s14  ;;  %p78_p2 = scmp.lt.s32.totalorder %s72_s14, %s72_s14 }
   0x6   :  { %p79_p3 = por %p78_p2, %p77_p1 }
   0x8   :  { %p80_p4 = pnand %p79_p3, %p73_p0 }
   0xa   :  { %83 = shalt.err (!%p80_p4)
}
   0xb   :  { %19 = dma.hbm_to_vmem [thread:$0]  %s142_s0, 32, %s17_s13, [#allocation3]  }
   0xc   :  { %104 = dma.done.wait [#allocation3], 32  }
   0xd   :  { %105 = vsyncadd [#allocation3], 4294967264  ;;  %s109_s17 = smov [#allocation5]   ;;  %v27_v0 = vld [vmem:[#allocation2] sm:$0x3] }
   0xe   :  { %s51_s18 = sshll.u32 %s109_s17, 4  ;;  %v60_v1 = vld [vmem:[%s143_s1] ss:$0 sm:$0xff]  ;;  %s52_s18 = int_to_ptr.vmem [resolvable:$true] %s51_s18 }
   0xf   :  { %v61_v2 = vld [vmem:[%s144_s2] ss:$0 sm:$0xff]  ;;  %v35_v3 = vmul.f32 %v60_v1, %v27_v0  ;;  %s84_s23 = scalar_lea.vmem %s52_s18, 32  ;;  %p89_p6 = scmp.lt.s32.totalorder %s52_s18, %s52_s18 }
  0x10   :  { %p85_p5 = scmp.ne.s32.totalorder %s52_s18, %s84_s23  ;;  %p90_p7 = scmp.lt.s32.totalorder %s84_s23, %s84_s23 }
  0x11   :  { %v43_v4 = vadd.f32 %v61_v2, %v35_v3 }
  0x12   :  { %p91_p8 = por %p90_p7, %p89_p6 }
  0x13   :  { %44 = vst [vmem:[#allocation5] sm:$0x3] %v43_v4 }
  0x14   :  { %p92_p9 = pnand %p91_p8, %p85_p5 }
  0x16   :  { %95 = shalt.err (!%p92_p9)
}
  0x17   :  { %54 = dma.vmem_to_hbm [thread:$0]  %s52_s18, 32, %s145_s3, [#allocation4]  }
  0x18   :  { %106 = dma.done.wait [#allocation4], 32  }
  0x19   :  { %107 = vsyncadd [#allocation4], 4294967264 }
  0x1a   :  { %58 = vsyncpa [#allocation3], 1 }
  0x1b   :  { %59 = vsyncpa [#allocation4], 1 }

</bundles_post_ra>
